<compile_context>
chip_gen: v6e
topology: v6e:2x2x1
jax: 0.10.0
libtpu: 0.0.40
codegen_flags: <defaults>
</compile_context>

<pallas_src>
import functools
import math

import jax
import jax.numpy as jnp
from jax.experimental import pallas as pl
from jax.experimental.pallas import tpu as pltpu


def _round_up(x, m):
    return (x + m - 1) // m * m


def _vmem_limit_bytes():
    """Generation-aware VMEM limit (v7x: 64 MiB physical, v5e/v6e: 128 MiB)."""
    try:
        phys = pltpu.get_tpu_info().vmem_capacity_bytes
    except Exception:  # pragma: no cover - not on TPU / API unavailable
        phys = 64 * 1024 * 1024
    return min(phys * 3 // 4, 96 * 1024 * 1024)


def _choose_rows(C, R, x_bytes, budget_bytes, rows_cap):
    """Rows-of-128-lanes per spatial tile.

    Per-row VMEM estimate: double-buffered inputs (C logit columns + 1 int8
    label column) plus ~(3C + 8) live f32 (rows, 128) temporaries.
    Returns (rows_per_tile, ragged) where ragged means R % rows != 0.
    """
    per_row = 128 * (2 * (C * x_bytes + 1) + 4 * (3 * C + 8))
    rt = int(budget_bytes // per_row)
    rt = max(32, min(rt, rows_cap))
    rt = rt // 32 * 32               # int8 label tiling granule is (32, 128)
    if rt >= R:
        return R, False              # single spatial tile == full extent
    return rt, (R % rt) != 0


def _dice_ce_kernel(x_ref, lab_ref,
                    ce_ref, cnt_ref, inter_ref, psum_ref,
                    ce_acc, cnt_acc, inter_acc, psum_acc,
                    *, C, rows_total, ragged, lane_masked):
    s = pl.program_id(1)
    num_s = pl.num_programs(1)

    # Reset the per-batch-element accumulators on the first spatial tile.
    @pl.when(s == 0)
    def _():
        ce_acc[...] = jnp.zeros_like(ce_acc)
        cnt_acc[...] = jnp.zeros_like(cnt_acc)
        inter_acc[...] = jnp.zeros_like(inter_acc)
        psum_acc[...] = jnp.zeros_like(psum_acc)

    lab = lab_ref[0, 0].astype(jnp.int32)          # (RT, 128) integer labels
    rt = lab.shape[0]

    if ragged:
        # The last grid tile sticks out past R: out-of-range rows hold garbage.
        row = s * rt + jax.lax.broadcasted_iota(jnp.int32, lab.shape, 0)
        lab = jnp.where(row < rows_total, lab, -1)

    # -1 marks both wrapper lane-padding and (when ragged) out-of-range rows.
    need_pmask = ragged or lane_masked
    if need_pmask:
        pvalid = lab >= 0

    # ---- channel softmax / log-softmax as C-1 dense elementwise ops ----
    # (C is a leading axis; every (RT, 128) slice fills all 8 sublanes.)
    xs = [x_ref[0, c].astype(jnp.float32) for c in range(C)]
    m = xs[0]
    for c in range(1, C):
        m = jnp.maximum(m, xs[c])
    zs = [xs[c] - m for c in range(C)]
    es = [jnp.exp(z) for z in zs]
    se = es[0]
    for c in range(1, C):
        se = se + es[c]
    # EUP reciprocal + one Newton step (raw approx is too coarse for the dice sums).
    inv_se = pl.reciprocal(se, approx=True)
    inv_se = inv_se * (2.0 - se * inv_se)
    logse = jnp.log(se)

    zero = jnp.zeros_like(se)
    ce_p, cnt_p, inter_p, psum_p = [], [], [], []
    for c in range(C):
        sel = lab == c                               # one-hot target predicate
        pc = es[c] * inv_se                          # softmax prob of class c
        logpc = zs[c] - logse                        # log-softmax of class c
        ce_p.append(jnp.sum(jnp.where(sel, logpc, zero), axis=0, keepdims=True))
        cnt_p.append(jnp.sum(jnp.where(sel, 1.0, 0.0), axis=0, keepdims=True))
        inter_p.append(jnp.sum(jnp.where(sel, pc, zero), axis=0, keepdims=True))
        if need_pmask:
            pc = jnp.where(pvalid, pc, zero)         # select (not *) so NaN can't leak
        psum_p.append(jnp.sum(pc, axis=0, keepdims=True))

    ce_acc[...] += jnp.concatenate(ce_p, axis=0)         # (C, 128) lane partials
    cnt_acc[...] += jnp.concatenate(cnt_p, axis=0)
    inter_acc[...] += jnp.concatenate(inter_p, axis=0)
    psum_acc[...] += jnp.concatenate(psum_p, axis=0)

    # ---- finalize per-batch-element partial sums on the last spatial tile ----
    @pl.when(s == num_s - 1)
    def _():
        ce_ref[0] = jnp.sum(ce_acc[...], axis=1, keepdims=True)      # (C, 1)
        cnt_ref[0] = jnp.sum(cnt_acc[...], axis=1, keepdims=True)
        inter_ref[0] = jnp.sum(inter_acc[...], axis=1, keepdims=True)
        psum_ref[0] = jnp.sum(psum_acc[...], axis=1, keepdims=True)


def dice_ce_loss(inputs, targets=None, class_weight=None, smooth=1.0,
                 labels=None, rows_cap=2048):
    """Forward pass of DiceCELoss.

    inputs : (B, C, *spatial) logits (f32 or bf16; bf16 streams as-is).
    targets: (B, C, *spatial) one-hot targets (torch-style).  May be omitted if
             integer `labels` of shape (B, *spatial) are provided directly
             (skips the argmax pass over the one-hot tensor).
    """
    B, C = inputs.shape[:2]
    S = int(math.prod(inputs.shape[2:]))

    x = inputs.reshape(B, C, S)
    if x.dtype not in (jnp.float32, jnp.bfloat16):
        x = x.astype(jnp.float32)

    if labels is None:
        if targets is None:
            raise ValueError("provide either one-hot `targets` or integer `labels`")
        # TODO(synk): the dice term assumes (near-)one-hot targets; pass integer
        # `labels` directly to avoid this full extra read of the one-hot tensor.
        labels = jnp.argmax(targets.reshape(B, C, S), axis=1)
    else:
        labels = labels.reshape(B, S)
    lab_dtype = jnp.int8 if C <= 127 else jnp.int32
    labels = labels.astype(lab_dtype)

    if class_weight is None:
        class_weight = jnp.ones((C,), jnp.float32)
    w = jnp.asarray(class_weight, jnp.float32).reshape(C)

    # Pack spatial into (rows, 128) so every per-channel tile fills all sublanes.
    s_pad = _round_up(S, 128)
    lane_masked = s_pad != S
    if lane_masked:
        # TODO(synk): this pad costs one extra HBM pass; typical segmentation
        # shapes (H*W a multiple of 128) skip it entirely.
        x = jnp.pad(x, ((0, 0), (0, 0), (0, s_pad - S)))
        labels = jnp.pad(labels, ((0, 0), (0, s_pad - S)), constant_values=-1)
    R = s_pad // 128
    x4 = x.reshape(B, C, R, 128)
    lab4 = labels.reshape(B, 1, R, 128)

    vmem_limit = _vmem_limit_bytes()
    rt, ragged = _choose_rows(C, R, x4.dtype.itemsize, vmem_limit // 2, rows_cap)
    n_s = pl.cdiv(R, rt)

    kernel = functools.partial(_dice_ce_kernel, C=C, rows_total=R,
                               ragged=ragged, lane_masked=lane_masked)

    out_sds = jax.ShapeDtypeStruct((B, C, 1), jnp.float32)
    out_spec = pl.BlockSpec((1, C, 1), lambda b, s: (b, 0, 0))
    ce_sum, cnt, inter, psum = pl.pallas_call(
        kernel,
        out_shape=(out_sds, out_sds, out_sds, out_sds),
        grid_spec=pltpu.PrefetchScalarGridSpec(
            num_scalar_prefetch=0,
            grid=(B, n_s),                      # spatial is the reduction axis
            in_specs=[
                pl.BlockSpec((1, C, rt, 128), lambda b, s: (b, 0, s, 0)),  # logits
                pl.BlockSpec((1, 1, rt, 128), lambda b, s: (b, 0, s, 0)),  # labels
            ],
            out_specs=[out_spec, out_spec, out_spec, out_spec],
            scratch_shapes=[pltpu.VMEM((C, 128), jnp.float32) for _ in range(4)],
        ),
        compiler_params=pltpu.CompilerParams(
            dimension_semantics=("parallel", "arbitrary"),
            vmem_limit_bytes=vmem_limit),
    )(x4, lab4)

    # Tiny final combine in plain JAX (class weights never enter the kernel).
    ce_sum = ce_sum[:, :, 0]
    cnt = cnt[:, :, 0]
    inter = inter[:, :, 0]
    psum = psum[:, :, 0]

    ce = -jnp.sum(w[None, :] * ce_sum) / jnp.sum(w[None, :] * cnt)
    ds = (2.0 * inter + smooth) / (psum + cnt + smooth)          # (B, C)
    dice_loss = 1.0 - jnp.sum(ds * w[None, :]) / (B * C)
    # TODO(synk): on v7x with B == 1 a second parallel spatial-split grid axis
    # would keep both TensorCores busy; not implemented here.
    return ce + dice_loss


def _reference(inputs, targets, class_weight=None, smooth=1.0):
    """Pure-JAX re-implementation of the PyTorch DiceCELoss (fp32)."""
    B, C = inputs.shape[:2]
    if class_weight is None:
        class_weight = jnp.ones((C,), jnp.float32)
    w = jnp.asarray(class_weight, jnp.float32)

    logp = jax.nn.log_softmax(inputs, axis=1)
    tgt = jnp.argmax(targets, axis=1)
    onehot = jax.nn.one_hot(tgt, C, axis=1, dtype=jnp.float32)
    w_pix = jnp.sum(w.reshape((1, C) + (1,) * (inputs.ndim - 2)) * onehot, axis=1)
    nll = -jnp.sum(logp * onehot, axis=1)
    ce = jnp.sum(w_pix * nll) / jnp.sum(w_pix)

    p = jax.nn.softmax(inputs, axis=1)
    pi = p.reshape(B, C, -1)
    ti = targets.reshape(B, C, -1)
    inter = jnp.sum(pi * ti, axis=2)
    den = jnp.sum(pi + ti, axis=2)
    ds = (2.0 * inter + smooth) / (den + smooth)
    dice_score = jnp.mean(ds, axis=0)
    dice_loss = 1.0 - jnp.mean(dice_score * w)
    return ce + dice_loss


if __name__ == "__main__":
    key = jax.random.PRNGKey(0)

    # (2,4,16,16): lane-aligned single-tile path; (2,4,5,5): lane-padded path;
    # (2,4,80,80) with rows_cap=32: multi-tile path with a ragged last tile.
    cases = [((2, 4, 16, 16), None, 1e-5),
             ((2, 4, 5, 5), None, 1e-5),
             ((2, 4, 80, 80), 32, 1e-4)]
    for (B, C, H, W), cap, tol in cases:
        k1, k2, key = jax.random.split(key, 3)
        inputs = jax.random.normal(k1, (B, C, H, W), dtype=jnp.float32)
        lab = jax.random.randint(k2, (B, H, W), 0, C)
        targets = jax.nn.one_hot(lab, C, axis=1, dtype=jnp.float32)   # (B, C, H, W)

        kwargs = {} if cap is None else {"rows_cap": cap}
        loss = jax.block_until_ready(dice_ce_loss(inputs, targets, **kwargs))
        ref = _reference(inputs, targets)
        assert jnp.allclose(loss, ref, atol=tol, rtol=tol), ((B, C, H, W), loss, ref)

    print("KERNEL_OK")
</pallas_src>

<mosaic_0001>
module attributes {stable_mosaic.version = 11 : i64} {
  func.func @_dice_ce_kernel(%arg0: i32, %arg1: i32, %arg2: memref<1x4x2x128xf32, #tpu.memory_space<vmem>>, %arg3: memref<1x1x2x128xi8, #tpu.memory_space<vmem>>, %arg4: memref<1x4x1xf32, #tpu.memory_space<vmem>>, %arg5: memref<1x4x1xf32, #tpu.memory_space<vmem>>, %arg6: memref<1x4x1xf32, #tpu.memory_space<vmem>>, %arg7: memref<1x4x1xf32, #tpu.memory_space<vmem>>, %arg8: memref<4x128xf32, #tpu.memory_space<vmem>>, %arg9: memref<4x128xf32, #tpu.memory_space<vmem>>, %arg10: memref<4x128xf32, #tpu.memory_space<vmem>>, %arg11: memref<4x128xf32, #tpu.memory_space<vmem>>) attributes {dimension_semantics = [#tpu.dimension_semantics<parallel>, #tpu.dimension_semantics<arbitrary>], iteration_bounds = array<i64: 2, 1>, scalar_prefetch = 0 : i64, scratch_operands = 4 : i64, tpu.core_type = #tpu.core_type<tc>, window_params = [{transform_indices = @transform_0, window_bounds = array<i64: 1, 4, 2, 128>}, {transform_indices = @transform_1, window_bounds = array<i64: 1, 1, 2, 128>}, {transform_indices = @transform_2, window_bounds = array<i64: 1, 4, 1>}, {transform_indices = @transform_3, window_bounds = array<i64: 1, 4, 1>}, {transform_indices = @transform_4, window_bounds = array<i64: 1, 4, 1>}, {transform_indices = @transform_5, window_bounds = array<i64: 1, 4, 1>}]} {
    %c0_i32 = arith.constant 0 : i32
    %0 = arith.cmpi eq, %arg1, %c0_i32 : i32
    %1 = arith.extui %0 : i1 to i32
    %c0_i32_0 = arith.constant 0 : i32
    %2 = arith.cmpi ne, %1, %c0_i32_0 : i32
    scf.if %2 {
      %cst_61 = arith.constant 0.000000e+00 : f32
      %122 = vector.broadcast %cst_61 : f32 to vector<4x128xf32>
      %c0_62 = arith.constant 0 : index
      %c0_63 = arith.constant 0 : index
      %123 = vector.load %arg8[%c0_62, %c0_63] : memref<4x128xf32, #tpu.memory_space<vmem>>, vector<4x128xf32>
      tpu.vector_store %arg8[%c0_62, %c0_63], %122 {strides = array<i32>} : memref<4x128xf32, #tpu.memory_space<vmem>>, vector<4x128xf32>,
      %cst_64 = arith.constant 0.000000e+00 : f32
      %124 = vector.broadcast %cst_64 : f32 to vector<4x128xf32>
      %c0_65 = arith.constant 0 : index
      %c0_66 = arith.constant 0 : index
      %125 = vector.load %arg9[%c0_65, %c0_66] : memref<4x128xf32, #tpu.memory_space<vmem>>, vector<4x128xf32>
      tpu.vector_store %arg9[%c0_65, %c0_66], %124 {strides = array<i32>} : memref<4x128xf32, #tpu.memory_space<vmem>>, vector<4x128xf32>,
      %cst_67 = arith.constant 0.000000e+00 : f32
      %126 = vector.broadcast %cst_67 : f32 to vector<4x128xf32>
      %c0_68 = arith.constant 0 : index
      %c0_69 = arith.constant 0 : index
      %127 = vector.load %arg10[%c0_68, %c0_69] : memref<4x128xf32, #tpu.memory_space<vmem>>, vector<4x128xf32>
      tpu.vector_store %arg10[%c0_68, %c0_69], %126 {strides = array<i32>} : memref<4x128xf32, #tpu.memory_space<vmem>>, vector<4x128xf32>,
      %cst_70 = arith.constant 0.000000e+00 : f32
      %128 = vector.broadcast %cst_70 : f32 to vector<4x128xf32>
      %c0_71 = arith.constant 0 : index
      %c0_72 = arith.constant 0 : index
      %129 = vector.load %arg11[%c0_71, %c0_72] : memref<4x128xf32, #tpu.memory_space<vmem>>, vector<4x128xf32>
      tpu.vector_store %arg11[%c0_71, %c0_72], %128 {strides = array<i32>} : memref<4x128xf32, #tpu.memory_space<vmem>>, vector<4x128xf32>,
    } else {
    }
    %c0 = arith.constant 0 : index
    %c0_1 = arith.constant 0 : index
    %c0_2 = arith.constant 0 : index
    %c0_3 = arith.constant 0 : index
    %3 = vector.load %arg3[%c0, %c0_1, %c0_2, %c0_3] : memref<1x1x2x128xi8, #tpu.memory_space<vmem>>, vector<1x1x2x128xi8>
    %4 = vector.shape_cast %3 : vector<1x1x2x128xi8> to vector<2x128xi8>
    %5 = arith.extsi %4 : vector<2x128xi8> to vector<2x128xi32>
    %c0_4 = arith.constant 0 : index
    %c0_5 = arith.constant 0 : index
    %c0_6 = arith.constant 0 : index
    %c0_7 = arith.constant 0 : index
    %6 = vector.load %arg2[%c0_4, %c0_5, %c0_6, %c0_7] : memref<1x4x2x128xf32, #tpu.memory_space<vmem>>, vector<1x1x2x128xf32>
    %7 = vector.shape_cast %6 : vector<1x1x2x128xf32> to vector<2x128xf32>
    %c0_8 = arith.constant 0 : index
    %c1 = arith.constant 1 : index
    %c0_9 = arith.constant 0 : index
    %c0_10 = arith.constant 0 : index
    %8 = vector.load %arg2[%c0_8, %c1, %c0_9, %c0_10] : memref<1x4x2x128xf32, #tpu.memory_space<vmem>>, vector<1x1x2x128xf32>
    %9 = vector.shape_cast %8 : vector<1x1x2x128xf32> to vector<2x128xf32>
    %c0_11 = arith.constant 0 : index
    %c2 = arith.constant 2 : index
    %c0_12 = arith.constant 0 : index
    %c0_13 = arith.constant 0 : index
    %10 = vector.load %arg2[%c0_11, %c2, %c0_12, %c0_13] : memref<1x4x2x128xf32, #tpu.memory_space<vmem>>, vector<1x1x2x128xf32>
    %11 = vector.shape_cast %10 : vector<1x1x2x128xf32> to vector<2x128xf32>
    %c0_14 = arith.constant 0 : index
    %c3 = arith.constant 3 : index
    %c0_15 = arith.constant 0 : index
    %c0_16 = arith.constant 0 : index
    %12 = vector.load %arg2[%c0_14, %c3, %c0_15, %c0_16] : memref<1x4x2x128xf32, #tpu.memory_space<vmem>>, vector<1x1x2x128xf32>
    %13 = vector.shape_cast %12 : vector<1x1x2x128xf32> to vector<2x128xf32>
    %14 = arith.maximumf %7, %9 : vector<2x128xf32>
    %15 = arith.maximumf %14, %11 : vector<2x128xf32>
    %16 = arith.maximumf %15, %13 : vector<2x128xf32>
    %17 = arith.subf %7, %16 : vector<2x128xf32>
    %18 = arith.subf %9, %16 : vector<2x128xf32>
    %19 = arith.subf %11, %16 : vector<2x128xf32>
    %20 = arith.subf %13, %16 : vector<2x128xf32>
    %21 = math.exp %17 : vector<2x128xf32>
    %22 = math.exp %18 : vector<2x128xf32>
    %23 = math.exp %19 : vector<2x128xf32>
    %24 = math.exp %20 : vector<2x128xf32>
    %25 = arith.addf %21, %22 : vector<2x128xf32>
    %26 = arith.addf %25, %23 : vector<2x128xf32>
    %27 = arith.addf %26, %24 : vector<2x128xf32>
    %28 = tpu.reciprocal %27 {approx = true} : vector<2x128xf32> -> vector<2x128xf32>
    %29 = arith.mulf %27, %28 : vector<2x128xf32>
    %cst = arith.constant 2.000000e+00 : f32
    %30 = vector.broadcast %cst : f32 to vector<2x128xf32>
    %31 = arith.subf %30, %29 : vector<2x128xf32>
    %32 = arith.mulf %28, %31 : vector<2x128xf32>
    %33 = math.log %27 : vector<2x128xf32>
    %cst_17 = arith.constant 0.000000e+00 : f32
    %34 = vector.broadcast %cst_17 : f32 to vector<2x128xf32>
    %c0_i32_18 = arith.constant 0 : i32
    %35 = vector.broadcast %c0_i32_18 : i32 to vector<2x128xi32>
    %36 = arith.cmpi eq, %5, %35 : vector<2x128xi32>
    %37 = arith.mulf %21, %32 : vector<2x128xf32>
    %38 = arith.subf %17, %33 : vector<2x128xf32>
    %39 = arith.select %36, %38, %34 : vector<2x128xi1>, vector<2x128xf32>
    %cst_19 = arith.constant dense<0.000000e+00> : vector<128xf32>
    %40 = vector.multi_reduction <add>, %39, %cst_19 [0] : vector<2x128xf32> to vector<128xf32>
    %41 = vector.shape_cast %40 : vector<128xf32> to vector<1x128xf32>
    %cst_20 = arith.constant 1.000000e+00 : f32
    %cst_21 = arith.constant 0.000000e+00 : f32
    %42 = vector.broadcast %cst_20 : f32 to vector<2x128xf32>
    %43 = vector.broadcast %cst_21 : f32 to vector<2x128xf32>
    %44 = arith.select %36, %42, %43 : vector<2x128xi1>, vector<2x128xf32>
    %cst_22 = arith.constant dense<0.000000e+00> : vector<128xf32>
    %45 = vector.multi_reduction <add>, %44, %cst_22 [0] : vector<2x128xf32> to vector<128xf32>
    %46 = vector.shape_cast %45 : vector<128xf32> to vector<1x128xf32>
    %47 = arith.select %36, %37, %34 : vector<2x128xi1>, vector<2x128xf32>
    %cst_23 = arith.constant dense<0.000000e+00> : vector<128xf32>
    %48 = vector.multi_reduction <add>, %47, %cst_23 [0] : vector<2x128xf32> to vector<128xf32>
    %49 = vector.shape_cast %48 : vector<128xf32> to vector<1x128xf32>
    %cst_24 = arith.constant dense<0.000000e+00> : vector<128xf32>
    %50 = vector.multi_reduction <add>, %37, %cst_24 [0] : vector<2x128xf32> to vector<128xf32>
    %51 = vector.shape_cast %50 : vector<128xf32> to vector<1x128xf32>
    %c1_i32 = arith.constant 1 : i32
    %52 = vector.broadcast %c1_i32 : i32 to vector<2x128xi32>
    %53 = arith.cmpi eq, %5, %52 : vector<2x128xi32>
    %54 = arith.mulf %22, %32 : vector<2x128xf32>
    %55 = arith.subf %18, %33 : vector<2x128xf32>
    %56 = arith.select %53, %55, %34 : vector<2x128xi1>, vector<2x128xf32>
    %cst_25 = arith.constant dense<0.000000e+00> : vector<128xf32>
    %57 = vector.multi_reduction <add>, %56, %cst_25 [0] : vector<2x128xf32> to vector<128xf32>
    %58 = vector.shape_cast %57 : vector<128xf32> to vector<1x128xf32>
    %cst_26 = arith.constant 1.000000e+00 : f32
    %cst_27 = arith.constant 0.000000e+00 : f32
    %59 = vector.broadcast %cst_26 : f32 to vector<2x128xf32>
    %60 = vector.broadcast %cst_27 : f32 to vector<2x128xf32>
    %61 = arith.select %53, %59, %60 : vector<2x128xi1>, vector<2x128xf32>
    %cst_28 = arith.constant dense<0.000000e+00> : vector<128xf32>
    %62 = vector.multi_reduction <add>, %61, %cst_28 [0] : vector<2x128xf32> to vector<128xf32>
    %63 = vector.shape_cast %62 : vector<128xf32> to vector<1x128xf32>
    %64 = arith.select %53, %54, %34 : vector<2x128xi1>, vector<2x128xf32>
    %cst_29 = arith.constant dense<0.000000e+00> : vector<128xf32>
    %65 = vector.multi_reduction <add>, %64, %cst_29 [0] : vector<2x128xf32> to vector<128xf32>
    %66 = vector.shape_cast %65 : vector<128xf32> to vector<1x128xf32>
    %cst_30 = arith.constant dense<0.000000e+00> : vector<128xf32>
    %67 = vector.multi_reduction <add>, %54, %cst_30 [0] : vector<2x128xf32> to vector<128xf32>
    %68 = vector.shape_cast %67 : vector<128xf32> to vector<1x128xf32>
    %c2_i32 = arith.constant 2 : i32
    %69 = vector.broadcast %c2_i32 : i32 to vector<2x128xi32>
    %70 = arith.cmpi eq, %5, %69 : vector<2x128xi32>
    %71 = arith.mulf %23, %32 : vector<2x128xf32>
    %72 = arith.subf %19, %33 : vector<2x128xf32>
    %73 = arith.select %70, %72, %34 : vector<2x128xi1>, vector<2x128xf32>
    %cst_31 = arith.constant dense<0.000000e+00> : vector<128xf32>
    %74 = vector.multi_reduction <add>, %73, %cst_31 [0] : vector<2x128xf32> to vector<128xf32>
    %75 = vector.shape_cast %74 : vector<128xf32> to vector<1x128xf32>
    %cst_32 = arith.constant 1.000000e+00 : f32
    %cst_33 = arith.constant 0.000000e+00 : f32
    %76 = vector.broadcast %cst_32 : f32 to vector<2x128xf32>
    %77 = vector.broadcast %cst_33 : f32 to vector<2x128xf32>
    %78 = arith.select %70, %76, %77 : vector<2x128xi1>, vector<2x128xf32>
    %cst_34 = arith.constant dense<0.000000e+00> : vector<128xf32>
    %79 = vector.multi_reduction <add>, %78, %cst_34 [0] : vector<2x128xf32> to vector<128xf32>
    %80 = vector.shape_cast %79 : vector<128xf32> to vector<1x128xf32>
    %81 = arith.select %70, %71, %34 : vector<2x128xi1>, vector<2x128xf32>
    %cst_35 = arith.constant dense<0.000000e+00> : vector<128xf32>
    %82 = vector.multi_reduction <add>, %81, %cst_35 [0] : vector<2x128xf32> to vector<128xf32>
    %83 = vector.shape_cast %82 : vector<128xf32> to vector<1x128xf32>
    %cst_36 = arith.constant dense<0.000000e+00> : vector<128xf32>
    %84 = vector.multi_reduction <add>, %71, %cst_36 [0] : vector<2x128xf32> to vector<128xf32>
    %85 = vector.shape_cast %84 : vector<128xf32> to vector<1x128xf32>
    %c3_i32 = arith.constant 3 : i32
    %86 = vector.broadcast %c3_i32 : i32 to vector<2x128xi32>
    %87 = arith.cmpi eq, %5, %86 : vector<2x128xi32>
    %88 = arith.mulf %24, %32 : vector<2x128xf32>
    %89 = arith.subf %20, %33 : vector<2x128xf32>
    %90 = arith.select %87, %89, %34 : vector<2x128xi1>, vector<2x128xf32>
    %cst_37 = arith.constant dense<0.000000e+00> : vector<128xf32>
    %91 = vector.multi_reduction <add>, %90, %cst_37 [0] : vector<2x128xf32> to vector<128xf32>
    %92 = vector.shape_cast %91 : vector<128xf32> to vector<1x128xf32>
    %cst_38 = arith.constant 1.000000e+00 : f32
    %cst_39 = arith.constant 0.000000e+00 : f32
    %93 = vector.broadcast %cst_38 : f32 to vector<2x128xf32>
    %94 = vector.broadcast %cst_39 : f32 to vector<2x128xf32>
    %95 = arith.select %87, %93, %94 : vector<2x128xi1>, vector<2x128xf32>
    %cst_40 = arith.constant dense<0.000000e+00> : vector<128xf32>
    %96 = vector.multi_reduction <add>, %95, %cst_40 [0] : vector<2x128xf32> to vector<128xf32>
    %97 = vector.shape_cast %96 : vector<128xf32> to vector<1x128xf32>
    %98 = arith.select %87, %88, %34 : vector<2x128xi1>, vector<2x128xf32>
    %cst_41 = arith.constant dense<0.000000e+00> : vector<128xf32>
    %99 = vector.multi_reduction <add>, %98, %cst_41 [0] : vector<2x128xf32> to vector<128xf32>
    %100 = vector.shape_cast %99 : vector<128xf32> to vector<1x128xf32>
    %cst_42 = arith.constant dense<0.000000e+00> : vector<128xf32>
    %101 = vector.multi_reduction <add>, %88, %cst_42 [0] : vector<2x128xf32> to vector<128xf32>
    %102 = vector.shape_cast %101 : vector<128xf32> to vector<1x128xf32>
    %c0_43 = arith.constant 0 : index
    %c0_44 = arith.constant 0 : index
    %103 = vector.load %arg8[%c0_43, %c0_44] : memref<4x128xf32, #tpu.memory_space<vmem>>, vector<4x128xf32>
    %104 = tpu.concatenate %41, %58, %75, %92 in 0 : vector<1x128xf32>, vector<1x128xf32>, vector<1x128xf32>, vector<1x128xf32> -> vector<4x128xf32>
    %105 = arith.addf %103, %104 : vector<4x128xf32>
    %c0_45 = arith.constant 0 : index
    %c0_46 = arith.constant 0 : index
    %106 = vector.load %arg8[%c0_45, %c0_46] : memref<4x128xf32, #tpu.memory_space<vmem>>, vector<4x128xf32>
    tpu.vector_store %arg8[%c0_45, %c0_46], %105 {strides = array<i32>} : memref<4x128xf32, #tpu.memory_space<vmem>>, vector<4x128xf32>,
    %c0_47 = arith.constant 0 : index
    %c0_48 = arith.constant 0 : index
    %107 = vector.load %arg9[%c0_47, %c0_48] : memref<4x128xf32, #tpu.memory_space<vmem>>, vector<4x128xf32>
    %108 = tpu.concatenate %46, %63, %80, %97 in 0 : vector<1x128xf32>, vector<1x128xf32>, vector<1x128xf32>, vector<1x128xf32> -> vector<4x128xf32>
    %109 = arith.addf %107, %108 : vector<4x128xf32>
    %c0_49 = arith.constant 0 : index
    %c0_50 = arith.constant 0 : index
    %110 = vector.load %arg9[%c0_49, %c0_50] : memref<4x128xf32, #tpu.memory_space<vmem>>, vector<4x128xf32>
    tpu.vector_store %arg9[%c0_49, %c0_50], %109 {strides = array<i32>} : memref<4x128xf32, #tpu.memory_space<vmem>>, vector<4x128xf32>,
    %c0_51 = arith.constant 0 : index
    %c0_52 = arith.constant 0 : index
    %111 = vector.load %arg10[%c0_51, %c0_52] : memref<4x128xf32, #tpu.memory_space<vmem>>, vector<4x128xf32>
    %112 = tpu.concatenate %49, %66, %83, %100 in 0 : vector<1x128xf32>, vector<1x128xf32>, vector<1x128xf32>, vector<1x128xf32> -> vector<4x128xf32>
    %113 = arith.addf %111, %112 : vector<4x128xf32>
    %c0_53 = arith.constant 0 : index
    %c0_54 = arith.constant 0 : index
    %114 = vector.load %arg10[%c0_53, %c0_54] : memref<4x128xf32, #tpu.memory_space<vmem>>, vector<4x128xf32>
    tpu.vector_store %arg10[%c0_53, %c0_54], %113 {strides = array<i32>} : memref<4x128xf32, #tpu.memory_space<vmem>>, vector<4x128xf32>,
    %c0_55 = arith.constant 0 : index
    %c0_56 = arith.constant 0 : index
    %115 = vector.load %arg11[%c0_55, %c0_56] : memref<4x128xf32, #tpu.memory_space<vmem>>, vector<4x128xf32>
    %116 = tpu.concatenate %51, %68, %85, %102 in 0 : vector<1x128xf32>, vector<1x128xf32>, vector<1x128xf32>, vector<1x128xf32> -> vector<4x128xf32>
    %117 = arith.addf %115, %116 : vector<4x128xf32>
    %c0_57 = arith.constant 0 : index
    %c0_58 = arith.constant 0 : index
    %118 = vector.load %arg11[%c0_57, %c0_58] : memref<4x128xf32, #tpu.memory_space<vmem>>, vector<4x128xf32>
    tpu.vector_store %arg11[%c0_57, %c0_58], %117 {strides = array<i32>} : memref<4x128xf32, #tpu.memory_space<vmem>>, vector<4x128xf32>,
    %c0_i32_59 = arith.constant 0 : i32
    %119 = arith.cmpi eq, %arg1, %c0_i32_59 : i32
    %120 = arith.extui %119 : i1 to i32
    %c0_i32_60 = arith.constant 0 : i32
    %121 = arith.cmpi ne, %120, %c0_i32_60 : i32
    scf.if %121 {
      %c0_61 = arith.constant 0 : index
      %c0_62 = arith.constant 0 : index
      %122 = vector.load %arg8[%c0_61, %c0_62] : memref<4x128xf32, #tpu.memory_space<vmem>>, vector<4x128xf32>
      %cst_63 = arith.constant dense<0.000000e+00> : vector<4xf32>
      %123 = vector.multi_reduction <add>, %122, %cst_63 [1] : vector<4x128xf32> to vector<4xf32>
      %124 = vector.shape_cast %123 : vector<4xf32> to vector<4x1xf32>
      %c0_64 = arith.constant 0 : index
      %c0_65 = arith.constant 0 : index
      %c0_66 = arith.constant 0 : index
      %125 = vector.load %arg4[%c0_64, %c0_65, %c0_66] : memref<1x4x1xf32, #tpu.memory_space<vmem>>, vector<1x4x1xf32>
      %126 = vector.shape_cast %125 : vector<1x4x1xf32> to vector<4x1xf32>
      %127 = vector.shape_cast %124 : vector<4x1xf32> to vector<1x4x1xf32>
      tpu.vector_store %arg4[%c0_64, %c0_65, %c0_66], %127 {strides = array<i32>} : memref<1x4x1xf32, #tpu.memory_space<vmem>>, vector<1x4x1xf32>,
      %c0_67 = arith.constant 0 : index
      %c0_68 = arith.constant 0 : index
      %128 = vector.load %arg9[%c0_67, %c0_68] : memref<4x128xf32, #tpu.memory_space<vmem>>, vector<4x128xf32>
      %cst_69 = arith.constant dense<0.000000e+00> : vector<4xf32>
      %129 = vector.multi_reduction <add>, %128, %cst_69 [1] : vector<4x128xf32> to vector<4xf32>
      %130 = vector.shape_cast %129 : vector<4xf32> to vector<4x1xf32>
      %c0_70 = arith.constant 0 : index
      %c0_71 = arith.constant 0 : index
      %c0_72 = arith.constant 0 : index
      %131 = vector.load %arg5[%c0_70, %c0_71, %c0_72] : memref<1x4x1xf32, #tpu.memory_space<vmem>>, vector<1x4x1xf32>
      %132 = vector.shape_cast %131 : vector<1x4x1xf32> to vector<4x1xf32>
      %133 = vector.shape_cast %130 : vector<4x1xf32> to vector<1x4x1xf32>
      tpu.vector_store %arg5[%c0_70, %c0_71, %c0_72], %133 {strides = array<i32>} : memref<1x4x1xf32, #tpu.memory_space<vmem>>, vector<1x4x1xf32>,
      %c0_73 = arith.constant 0 : index
      %c0_74 = arith.constant 0 : index
      %134 = vector.load %arg10[%c0_73, %c0_74] : memref<4x128xf32, #tpu.memory_space<vmem>>, vector<4x128xf32>
      %cst_75 = arith.constant dense<0.000000e+00> : vector<4xf32>
      %135 = vector.multi_reduction <add>, %134, %cst_75 [1] : vector<4x128xf32> to vector<4xf32>
      %136 = vector.shape_cast %135 : vector<4xf32> to vector<4x1xf32>
      %c0_76 = arith.constant 0 : index
      %c0_77 = arith.constant 0 : index
      %c0_78 = arith.constant 0 : index
      %137 = vector.load %arg6[%c0_76, %c0_77, %c0_78] : memref<1x4x1xf32, #tpu.memory_space<vmem>>, vector<1x4x1xf32>
      %138 = vector.shape_cast %137 : vector<1x4x1xf32> to vector<4x1xf32>
      %139 = vector.shape_cast %136 : vector<4x1xf32> to vector<1x4x1xf32>
      tpu.vector_store %arg6[%c0_76, %c0_77, %c0_78], %139 {strides = array<i32>} : memref<1x4x1xf32, #tpu.memory_space<vmem>>, vector<1x4x1xf32>,
      %c0_79 = arith.constant 0 : index
      %c0_80 = arith.constant 0 : index
      %140 = vector.load %arg11[%c0_79, %c0_80] : memref<4x128xf32, #tpu.memory_space<vmem>>, vector<4x128xf32>
      %cst_81 = arith.constant dense<0.000000e+00> : vector<4xf32>
      %141 = vector.multi_reduction <add>, %140, %cst_81 [1] : vector<4x128xf32> to vector<4xf32>
      %142 = vector.shape_cast %141 : vector<4xf32> to vector<4x1xf32>
      %c0_82 = arith.constant 0 : index
      %c0_83 = arith.constant 0 : index
      %c0_84 = arith.constant 0 : index
      %143 = vector.load %arg7[%c0_82, %c0_83, %c0_84] : memref<1x4x1xf32, #tpu.memory_space<vmem>>, vector<1x4x1xf32>
      %144 = vector.shape_cast %143 : vector<1x4x1xf32> to vector<4x1xf32>
      %145 = vector.shape_cast %142 : vector<4x1xf32> to vector<1x4x1xf32>
      tpu.vector_store %arg7[%c0_82, %c0_83, %c0_84], %145 {strides = array<i32>} : memref<1x4x1xf32, #tpu.memory_space<vmem>>, vector<1x4x1xf32>,
    } else {
    }
    return
  }
  func.func @transform_0(%arg0: i32, %arg1: i32) -> (i32, i32, i32, i32) {
    %c0_i32 = arith.constant 0 : i32
    %c0_i32_0 = arith.constant 0 : i32
    %c0_i32_1 = arith.constant 0 : i32
    return %arg0, %c0_i32, %arg1, %c0_i32_0 : i32, i32, i32, i32
  }
  func.func @transform_1(%arg0: i32, %arg1: i32) -> (i32, i32, i32, i32) {
    %c0_i32 = arith.constant 0 : i32
    %c0_i32_0 = arith.constant 0 : i32
    %c0_i32_1 = arith.constant 0 : i32
    return %arg0, %c0_i32, %arg1, %c0_i32_0 : i32, i32, i32, i32
  }
  func.func @transform_2(%arg0: i32, %arg1: i32) -> (i32, i32, i32) {
    %c0_i32 = arith.constant 0 : i32
    %c0_i32_0 = arith.constant 0 : i32
    %c0_i32_1 = arith.constant 0 : i32
    return %arg0, %c0_i32, %c0_i32_0 : i32, i32, i32
  }
  func.func @transform_3(%arg0: i32, %arg1: i32) -> (i32, i32, i32) {
    %c0_i32 = arith.constant 0 : i32
    %c0_i32_0 = arith.constant 0 : i32
    %c0_i32_1 = arith.constant 0 : i32
    return %arg0, %c0_i32, %c0_i32_0 : i32, i32, i32
  }
  func.func @transform_4(%arg0: i32, %arg1: i32) -> (i32, i32, i32) {
    %c0_i32 = arith.constant 0 : i32
    %c0_i32_0 = arith.constant 0 : i32
    %c0_i32_1 = arith.constant 0 : i32
    return %arg0, %c0_i32, %c0_i32_0 : i32, i32, i32
  }
  func.func @transform_5(%arg0: i32, %arg1: i32) -> (i32, i32, i32) {
    %c0_i32 = arith.constant 0 : i32
    %c0_i32_0 = arith.constant 0 : i32
    %c0_i32_1 = arith.constant 0 : i32
    return %arg0, %c0_i32, %c0_i32_0 : i32, i32, i32
  }
}

</mosaic_0001>

<bundles_post_ra>
// kernel: tpu_custom_call.1
= control target key start
LH: loop header
LB: loop body
LE: loop exit
PB: predicated region body
PF: predicated region fallthrough
CT: control target
= control target key end

     0   :  { %11 = vsyncpa [#allocation7], 0  ;;  %s1197_s0 = inlined_call_operand.hbm [shape: f32[2,4,2,128], index: 0, kind: input, shape index: {}]   ;;  %s1198_s1 = inlined_call_operand.hbm [shape: s8[2,1,2,128], index: 1, kind: input, shape index: {}]   ;;  %s1199_s2 = inlined_call_operand.vmem [shape: f32[2,4,1], index: 2, kind: output, shape index: {0}]   ;;  %s1200_s3 = inlined_call_operand.vmem [shape: f32[2,4,1], index: 3, kind: output, shape index: {1}]   ;;  %s1201_s4 = inlined_call_operand.vmem [shape: f32[2,4,1], index: 4, kind: output, shape index: {2}]   ;;  %s1202_s5 = inlined_call_operand.vmem [shape: f32[2,4,1], index: 5, kind: output, shape index: {3}]  }
   0x1   :  { %13 = vsyncpa [#allocation7 + $0x1], 0 }
   0x2   :  { %14 = vsyncpa [#allocation9], 0 }
   0x3   :  { %16 = vsyncpa [#allocation9 + $0x1], 0  ;;  %s986_s18 = smov 0   ;;  %s988_s19 = smov 0  }
   0x4   :  { %s990_s20 = smov 0   ;;  %s992_s21 = smov 0  }
   0x5   :  { %s994_s22 = smov 0   ;;  %s996_s23 = smov 0  }
   0x6 LB: > { %s744_s24 = sadd.s32 4294967295, %s949_s23   ;;  %s34_s25 = sadd.s32 1, %s945_s22  ;;  %s949_s23 = sphi %s996_s23, %s22_s23   ;;  %s945_s22 = sphi %s994_s22, %s1211_s22   ;;  %s941_s21 = sphi %s992_s21, %s1210_s21   ;;  %s937_s20 = sphi %s990_s20, %s1209_s20   ;;  %s933_s19 = sphi %s988_s19, %s1208_s19   ;;  %s929_s18 = sphi %s986_s18, %s1207_s18  }
   0x7   : > { %p36_p0 = scmp.ge.s32.totalorder %s34_s25, 2  ;;  %s43_s26 = sadd.s32 1, %s937_s20 }
   0x8   : > { %p50_p1 = scmp.ne.s32.totalorder %s937_s20, %s933_s19  ;;  %p51_p2 = scmp.eq.s32.totalorder %s949_s23, 0 }
   0x9   : > { %s1213_s25 = smov (%p36_p0, %s34_s25), 0  ;;  %p56_p4 = scmp.ne.s32.totalorder %s933_s19, %s929_s18 }
   0xa   : > { %p1022_p3 = por %p51_p2, %p50_p1  ;;  %s38_s28 = ssub.s32 %s945_s22, %s1213_s25 }
   0xb   : > { %p57_p5 = scmp.eq.s32.totalorder %s744_s24, 0  ;;  %p41_p6 = scmp.eq.s32.totalorder %s38_s28, 0 }
   0xc   : > { %p775_p8 = scmp.lt.s32.totalorder %s949_s23, 2  ;;  %s1038_s6 = sand.u32 1, %s937_s20  }
   0xd   : > { %p1029_p7 = por %p57_p5, %p56_p4  ;;  %s763_s7 = sshll.u32 %s945_s22, 7 }
   0xe   : > { %s1035_s30 = scalar_select %p41_p6, %s937_s20, %s43_s26  }
   0xf   : > { %s748_s8 = sshll.u32 %s1038_s6, 3  ;;  %s223_s11 = scalar_lea.hbm %s1197_s0, %s763_s7 }
  0x10   : > { %s216_s12 = scalar_lea.vmem [#allocation6], %s748_s8  ;;  %p1047_p9 = pnand %p775_p8, %p1022_p3 }
  0x11   : > { %s224_s13 = sshll.u32 %s216_s12, 4  ;;  %s213_s15 = scalar_lea.sflag [#allocation7], %s1038_s6  ;;  %s225_s13 = int_to_ptr.vmem [resolvable:$true] %s224_s13 }
  0x12   : > { %p841_p10 = pneg %p1047_p9  ;;  %s852_s16 = scalar_lea.vmem %s225_s13, 128 }
  0x13   : > { %p853_p11 = scmp.ne.s32.totalorder %s225_s13, %s852_s16  ;;  %s951_s17 = smov [#allocation6]  }
  0x14   : > { %s857_s18 = sshll.u32 %s951_s17, 4  ;;  %s858_s18 = int_to_ptr.vmem [resolvable:$false] %s857_s18 }
  0x15   : > { %p855_p12 = pnand %p853_p11, %p841_p10  ;;  %s859_s24 = scalar_lea.vmem %s858_s18, 256 }
  0x16   : > { %p860_p0 = scmp.lt.s32.totalorder %s225_s13, %s858_s18  ;;  %p861_p1 = scmp.lt.s32.totalorder %s859_s24, %s852_s16 }
  0x17   : > { %p856_p13 = pneg %p855_p12 }
  0x18   : > { %p862_p2 = por %p861_p1, %p860_p0 }
  0x1a   : > { %p863_p3 = pnand %p862_p2, %p856_p13 }
  0x1c   : > { %866 = shalt.err (!%p863_p3)
}
  0x1d   : > { %s952_s26 = smov 32   ;;  %s953_s27 = smov 2  }
  0x1e   : > { %771 = dma.hbm_to_vmem [thread:$0]  (!%p1047_p9), %s223_s11, 128, %s225_s13, %s213_s15, %s952_s26, %s952_s26, %s953_s27  }
  0x1f   : > { %p752_p4 = scmp.ge.s32.totalorder %s949_s23, 1  ;;  %p250_p5 = scmp.lt.s32.totalorder %s949_s23, 3 }
  0x20   : > { %s751_s7 = sshll.u32 %s945_s22, 4  ;;  %s237_s12 = scalar_lea.vmem [#allocation8], %s1038_s6 }
  0x21   : > { %p1061_p6 = pnand %p752_p4, %p250_p5  ;;  %s243_s10 = scalar_lea.hbm %s1198_s1, %s751_s7 }
  0x22   : > { %s245_s16 = sshll.u32 %s237_s12, 4  ;;  %s235_s17 = scalar_lea.sflag [#allocation9], %s1038_s6  ;;  %s246_s16 = int_to_ptr.vmem [resolvable:$true] %s245_s16 }
  0x23   : > { %s880_s18 = scalar_lea.vmem %s246_s16, 16  ;;  %s954_s11 = smov [#allocation8]  }
  0x24   : > { %p881_p8 = scmp.ne.s32.totalorder %s246_s16, %s880_s18  ;;  %s885_s13 = sshll.u32 %s954_s11, 4  ;;  %s886_s13 = int_to_ptr.vmem [resolvable:$false] %s885_s13 }
  0x25   : > { %s887_s15 = scalar_lea.vmem %s886_s13, 32  ;;  %p888_p13 = scmp.lt.s32.totalorder %s246_s16, %s886_s13 }
  0x26   : > { %p883_p11 = pnand %p881_p8, %p841_p10  ;;  %p889_p0 = scmp.lt.s32.totalorder %s887_s15, %s880_s18 }
  0x28   : > { %p884_p12 = pneg %p883_p11  ;;  %p890_p1 = por %p889_p0, %p888_p13 }
  0x2a   : > { %p891_p2 = pnand %p890_p1, %p884_p12 }
  0x2c   : > { %894 = shalt.err (!%p891_p2)
}
  0x2d   : > { %774 = dma.hbm_to_vmem [thread:$0]  (!%p1047_p9), %s243_s10, 16, %s246_s16, %s235_s17  }
  0x2e   : > { %254 = sbr.rel (%p1061_p6) target bundleno = 290 (0x122), region = 28  ;;  %s256_s6 = sand.u32 (!%p1061_p6), 1, %s933_s19  }
  0x2f   : > { %s753_s24 = sshll.u32 (!%p1061_p6), %s256_s6, 3  ;;  %s257_s26 = scalar_lea.sflag (!%p1061_p6), [#allocation7], %s256_s6 }
  0x30   : > { %s260_s27 = scalar_lea.vmem (!%p1061_p6), [#allocation6], %s753_s24 }
  0x33   : > { %920 = dma.done.wait (%p1029_p7), %s257_s26, 128  }
  0x34   : > { %922 = vsyncadd (%p1029_p7), %s257_s26, 4294967168  ;;  %s266_s7 = scalar_lea.sflag [#allocation9], %s256_s6  ;;  %s268_s8 = scalar_lea.vmem [#allocation8], %s256_s6 }
  0x35   : > { %924 = dma.done.wait (%p1029_p7), %s266_s7, 16  }
  0x36   : > { %926 = vsyncadd (%p1029_p7), %s266_s7, 4294967280  ;;  %v955_v0 = vmov 0.0   ;;  %v334_v1 = vld [vmem:[%s268_s8] sm:$0x1]  ;;  %v336_v2 = vld [vmem:[%s260_s27] sm:$0x3] }
  0x37   : > { %332 = vst [vmem:[#allocation4] sm:$0xf] %v955_v0  ;;  %330 = vst [vmem:[#allocation2] sm:$0xf] %v955_v0  ;;  %v758_v3 = vld [vmem:[%s260_s27 + $0x2] sm:$0x3]  ;;  %v1087_v4 = vunpack.c.0.s8 %v334_v1 }
  0x38   : > { %331 = vst [vmem:[#allocation3] sm:$0xf] %v955_v0  ;;  %333 = vst [vmem:[#allocation5] sm:$0xf] %v955_v0  ;;  %v759_v5 = vld [vmem:[%s260_s27 + $0x4] sm:$0x3]  ;;  %v343_v6 = vmax.f32 %v336_v2, %v758_v3 }
  0x39   : > { %v760_v7 = vld [vmem:[%s260_s27 + $0x6] sm:$0x3]  ;;  %vm371_vm0 = vcmask 1041408   ;;  %vm367_vm1 = vcmp.eq.s32.totalorder %v1087_v4, 0  ;;  %vm402_vm2 = vcmp.eq.s32.totalorder %v1087_v4, 1  ;;  %vm436_vm3 = vcmp.eq.s32.totalorder %v1087_v4, 2 }
  0x3a   : > { %v344_v8 = vmax.f32 %v343_v6, %v759_v5  ;;  %vm470_vm4 = vcmp.eq.s32.totalorder %v1087_v4, 3  ;;  %v379_v9 = vsel %vm367_vm1, 1.0, %v955_v0  ;;  %v413_v10 = vsel %vm402_vm2, 1.0, %v955_v0  ;;  %p310_p7 = scmp.lt.s32.totalorder %s941_s21, 1 }
  0x3b   : > { %v447_v11 = vsel %vm436_vm3, 1.0, %v955_v0  ;;  %v380_v13 = vsel %vm371_vm0, %v379_v9, 0.0  ;;  %v414_v14 = vsel %vm371_vm0, %v413_v10, 0.0  ;;  %v481_v19 = vsel %vm470_vm4, 1.0, %v955_v0 }
  0x3c   : > { %v345_v12 = vmax.f32 %v344_v8, %v760_v7  ;;  %v448_v15 = vsel %vm371_vm0, %v447_v11, 0.0  ;;  %v381_v16 = vrot.slane %v380_v13, 4  ;;  %v415_v17 = vrot.slane %v414_v14, 4  ;;  %s1215_s21 = smov (!%p310_p7, %s941_s21), 1 }
  0x3d   : > { %v449_v18 = vrot.slane %v448_v15, 4  ;;  %v482_v27 = vsel %vm371_vm0, %v481_v19, 0.0  ;;  %vm505_vm5 = vcmask 1040384   ;;  %vm508_vm6 = vcmask 1042432   ;;  %s754_s29 = sshll.u32 %s1215_s21, 2 }
  0x3e   : > { %v346_v20 = vsub.f32 %v336_v2, %v345_v12  ;;  %v347_v21 = vsub.f32 %v758_v3, %v345_v12  ;;  %v348_v22 = vsub.f32 %v759_v5, %v345_v12  ;;  %v349_v23 = vsub.f32 %v760_v7, %v345_v12  ;;  %s321_s9 = scalar_lea.vmem %s1201_s4, %s754_s29  ;;  %s313_s16 = scalar_lea.vmem %s1199_s2, %s754_s29 }
  0x3f   : > { %v382_v24 = vadd.f32 %v381_v16, %v380_v13  ;;  %v416_v25 = vadd.f32 %v415_v17, %v414_v14  ;;  %v450_v26 = vadd.f32 %v449_v18, %v448_v15  ;;  %v483_v35 = vrot.slane %v482_v27, 4  ;;  %v512_v52 = vld [vmem:[#allocation3] sm:$0xf]  ;;  %s317_s11 = scalar_lea.vmem %s1200_s3, %s754_s29  ;;  %s325_s15 = scalar_lea.vmem %s1202_s5, %s754_s29 }
  0x40   : > { %v350_v28 = vmul.f32 1.442695, %v346_v20  ;;  %v352_v29 = vmul.f32 1.442695, %v347_v21  ;;  %v354_v30 = vmul.f32 1.442695, %v348_v22 }
  0x41   : > { %v356_v31 = vmul.f32 1.442695, %v349_v23  ;;  %v383_v32 = vrot.slane %v382_v24, 2  ;;  %v417_v33 = vrot.slane %v416_v25, 2  ;;  %v451_v34 = vrot.slane %v450_v26, 2 }
  0x42   : > { %827 = vpow2.f32 %v350_v28  ;;  %v484_v39 = vadd.f32 %v483_v35, %v482_v27  ;;  %vm534_vm7 = vcmask 1043456   ;;  %vm538_vm8 = vcmask 3072  }
  0x43   : > { %829 = vpow2.f32 %v352_v29  ;;  %v384_v36 = vadd.f32 %v383_v32, %v382_v24  ;;  %v418_v37 = vadd.f32 %v417_v33, %v416_v25  ;;  %v452_v38 = vadd.f32 %v451_v34, %v450_v26 }
  0x44   : > { %831 = vpow2.f32 %v354_v30  ;;  %v485_v43 = vrot.slane %v484_v39, 2 }
  0x45   : > { %833 = vpow2.f32 %v356_v31  ;;  %v385_v40 = vrot.slane %v384_v36, 1  ;;  %v419_v41 = vrot.slane %v418_v37, 1  ;;  %v453_v42 = vrot.slane %v452_v38, 1 }
  0x46   : > { %v486_v47 = vadd.f32 %v485_v43, %v484_v39 }
  0x47   : > { %v386_v44 = vadd.f32 %v385_v40, %v384_v36  ;;  %v420_v45 = vadd.f32 %v419_v41, %v418_v37  ;;  %v454_v46 = vadd.f32 %v453_v42, %v452_v38 }
  0x48   : > { %v487_v49 = vrot.slane %v486_v47, 1 }
  0x49   : > { %v513_v48 = vsel %vm505_vm5, %v386_v44, %v420_v45 }
  0x4a   : > { %v514_v50 = vsel %vm371_vm0, %v513_v48, %v454_v46  ;;  %v488_v51 = vadd.f32 %v487_v49, %v486_v47 }
  0x4c   : > { %v515_v53 = vsel %vm508_vm6, %v514_v50, %v488_v51 }
  0x4d   : > { %v516_v55 = vadd.f32 %v515_v53, %v512_v52 }
  0x4f   : > { %v828_v54 = vpop.eup %827  ;;  %517 = vst [vmem:[#allocation3] sm:$0xf] %v516_v55 }
  0x50   : > { %v830_v56 = vpop.eup %829 }
  0x51   : > { %v832_v57 = vpop.eup %831  ;;  %v358_v58 = vadd.f32 %v830_v56, %v828_v54 }
  0x52   : > { %v834_v59 = vpop.eup %833 }
  0x53   : > { %v359_v60 = vadd.f32 %v832_v57, %v358_v58 }
  0x55   : > { %v360_v61 = vadd.f32 %v834_v59, %v359_v60 }
  0x57   : > { %835 = vrcp.f32 %v360_v61 }
  0x58   : > { %837 = vlog2.f32 %v360_v61 }
  0x64   : > { %v836_v62 = vpop.eup %835 }
  0x65   : > { %v838_v63 = vpop.eup %837  ;;  %v362_v0 = vmul.f32 %v836_v62, %v360_v61 }
  0x66   : > { %v366_v1 = vmul.f32 0.6931472, %v838_v63 }
  0x67   : > { %v363_v2 = vsub.f32 2.0, %v362_v0 }
  0x68   : > { %v369_v3 = vsub.f32 %v346_v20, %v366_v1  ;;  %v404_v5 = vsub.f32 %v347_v21, %v366_v1  ;;  %v438_v6 = vsub.f32 %v348_v22, %v366_v1  ;;  %v472_v7 = vsub.f32 %v349_v23, %v366_v1 }
  0x69   : > { %v364_v8 = vmul.f32 %v836_v62, %v363_v2 }
  0x6a   : > { %v370_v9 = vsel %vm367_vm1, %v369_v3, 0.0  ;;  %v405_v10 = vsel %vm402_vm2, %v404_v5, 0.0  ;;  %v439_v11 = vsel %vm436_vm3, %v438_v6, 0.0  ;;  %v473_v12 = vsel %vm470_vm4, %v472_v7, 0.0 }
  0x6b   : > { %v1116_v13 = vmul.f32 %v828_v54, %v364_v8  ;;  %v1118_v14 = vmul.f32 %v830_v56, %v364_v8  ;;  %v1120_v15 = vmul.f32 %v832_v57, %v364_v8  ;;  %v1122_v16 = vmul.f32 %v834_v59, %v364_v8 }
  0x6c   : > { %v372_v17 = vsel %vm371_vm0, %v370_v9, 0.0  ;;  %v406_v18 = vsel %vm371_vm0, %v405_v10, 0.0  ;;  %v440_v19 = vsel %vm371_vm0, %v439_v11, 0.0  ;;  %v474_v20 = vsel %vm371_vm0, %v473_v12, 0.0 }
  0x6d   : > { %v387_v21 = vsel %vm367_vm1, %v1116_v13, 0.0  ;;  %v421_v22 = vsel %vm402_vm2, %v1118_v14, 0.0  ;;  %v455_v23 = vsel %vm436_vm3, %v1120_v15, 0.0  ;;  %v489_v24 = vsel %vm470_vm4, %v1122_v16, 0.0 }
  0x6e   : > { %v388_v25 = vsel %vm371_vm0, %v387_v21, 0.0  ;;  %v422_v26 = vsel %vm371_vm0, %v421_v22, 0.0  ;;  %v456_v27 = vsel %vm371_vm0, %v455_v23, 0.0  ;;  %v490_v28 = vsel %vm371_vm0, %v489_v24, 0.0  ;;  %v504_v23 = vld [vmem:[#allocation2] sm:$0xf] }
  0x6f   : > { %v389_v29 = vrot.slane %v388_v25, 4  ;;  %v423_v30 = vrot.slane %v422_v26, 4  ;;  %v457_v31 = vrot.slane %v456_v27, 4  ;;  %v491_v32 = vrot.slane %v490_v28, 4 }
  0x70   : > { %v373_v33 = vrot.slane %v372_v17, 4  ;;  %v407_v34 = vrot.slane %v406_v18, 4  ;;  %v441_v35 = vrot.slane %v440_v19, 4  ;;  %v475_v36 = vrot.slane %v474_v20, 4 }
  0x71   : > { %v390_v37 = vadd.f32 %v389_v29, %v388_v25  ;;  %v424_v38 = vadd.f32 %v423_v30, %v422_v26  ;;  %v458_v4 = vadd.f32 %v457_v31, %v456_v27  ;;  %v492_v39 = vadd.f32 %v491_v32, %v490_v28 }
  0x72   : > { %v374_v40 = vadd.f32 %v373_v33, %v372_v17  ;;  %v408_v41 = vadd.f32 %v407_v34, %v406_v18  ;;  %v442_v42 = vadd.f32 %v441_v35, %v440_v19  ;;  %v476_v43 = vadd.f32 %v475_v36, %v474_v20  ;;  %v518_v17 = vld [vmem:[#allocation4] sm:$0xf] }
  0x73   : > { %v391_v44 = vrot.slane %v390_v37, 2  ;;  %v425_v45 = vrot.slane %v424_v38, 2  ;;  %v459_v46 = vrot.slane %v458_v4, 2  ;;  %v493_v47 = vrot.slane %v492_v39, 2 }
  0x74   : > { %v375_v48 = vrot.slane %v374_v40, 2  ;;  %v409_v49 = vrot.slane %v408_v41, 2  ;;  %v443_v50 = vrot.slane %v442_v42, 2  ;;  %v477_v51 = vrot.slane %v476_v43, 2 }
  0x75   : > { %v392_v52 = vadd.f32 %v391_v44, %v390_v37  ;;  %v426_v53 = vadd.f32 %v425_v45, %v424_v38  ;;  %v460_v54 = vadd.f32 %v459_v46, %v458_v4  ;;  %v494_v55 = vadd.f32 %v493_v47, %v492_v39 }
  0x76   : > { %v376_v56 = vadd.f32 %v375_v48, %v374_v40  ;;  %v410_v57 = vadd.f32 %v409_v49, %v408_v41  ;;  %v444_v58 = vadd.f32 %v443_v50, %v442_v42  ;;  %v478_v59 = vadd.f32 %v477_v51, %v476_v43 }
  0x77   : > { %v393_v60 = vrot.slane %v392_v52, 1  ;;  %v427_v61 = vrot.slane %v426_v53, 1  ;;  %v461_v62 = vrot.slane %v460_v54, 1  ;;  %v495_v63 = vrot.slane %v494_v55, 1 }
  0x78   : > { %v377_v0 = vrot.slane %v376_v56, 1  ;;  %v411_v1 = vrot.slane %v410_v57, 1  ;;  %v445_v2 = vrot.slane %v444_v58, 1  ;;  %v479_v3 = vrot.slane %v478_v59, 1 }
  0x79   : > { %v394_v5 = vadd.f32 %v393_v60, %v392_v52  ;;  %v428_v6 = vadd.f32 %v427_v61, %v426_v53  ;;  %v462_v7 = vadd.f32 %v461_v62, %v460_v54  ;;  %v496_v8 = vadd.f32 %v495_v63, %v494_v55  ;;  %v540_v53 = vld [vmem:[#allocation3] sm:$0xf] }
  0x7a   : > { %v378_v9 = vadd.f32 %v377_v0, %v376_v56  ;;  %v412_v10 = vadd.f32 %v411_v1, %v410_v57  ;;  %v446_v11 = vadd.f32 %v445_v2, %v444_v58  ;;  %v480_v12 = vadd.f32 %v479_v3, %v478_v59  ;;  %v524_v56 = vld [vmem:[#allocation5] sm:$0xf] }
  0x7b   : > { %v519_v18 = vsel %vm505_vm5, %v394_v5, %v428_v6  ;;  %v395_v19 = vsel %vm371_vm0, %v1116_v13, 0.0  ;;  %v429_v20 = vsel %vm371_vm0, %v1118_v14, 0.0  ;;  %v463_v21 = vsel %vm371_vm0, %v1120_v15, 0.0 }
  0x7c   : > { %v520_v22 = vsel %vm371_vm0, %v519_v18, %v462_v7  ;;  %v506_v24 = vsel %vm505_vm5, %v378_v9, %v412_v10  ;;  %v396_v25 = vrot.slane %v395_v19, 4  ;;  %v430_v26 = vrot.slane %v429_v20, 4 }
  0x7d   : > { %v521_v27 = vsel %vm508_vm6, %v520_v22, %v496_v8  ;;  %v507_v28 = vsel %vm371_vm0, %v506_v24, %v446_v11  ;;  %v464_v29 = vrot.slane %v463_v21, 4  ;;  %v497_v13 = vsel %vm371_vm0, %v1122_v16, 0.0 }
  0x7e   : > { %v522_v30 = vadd.f32 %v521_v27, %v518_v17  ;;  %v509_v14 = vsel %vm508_vm6, %v507_v28, %v480_v12  ;;  %v397_v31 = vadd.f32 %v396_v25, %v395_v19  ;;  %v431_v15 = vadd.f32 %v430_v26, %v429_v20 }
  0x7f   : > { %v510_v32 = vadd.f32 %v509_v14, %v504_v23  ;;  %v465_v33 = vadd.f32 %v464_v29, %v463_v21  ;;  %v498_v34 = vrot.slane %v497_v13, 4  ;;  %v541_v59 = vsel %vm534_vm7, %v540_v53, 0.0 }
  0x80   : > { %523 = vst [vmem:[#allocation4] sm:$0xf] %v522_v30  ;;  %v398_v35 = vrot.slane %v397_v31, 2  ;;  %v432_v36 = vrot.slane %v431_v15, 2 }
  0x81   : > { %511 = vst [vmem:[#allocation2] sm:$0xf] %v510_v32  ;;  %v466_v37 = vrot.slane %v465_v33, 2  ;;  %v499_v38 = vadd.f32 %v498_v34, %v497_v13 }
  0x82   : > { %v399_v4 = vadd.f32 %v398_v35, %v397_v31  ;;  %v433_v39 = vadd.f32 %v432_v36, %v431_v15 }
  0x83   : > { %v467_v40 = vadd.f32 %v466_v37, %v465_v33  ;;  %v500_v41 = vrot.slane %v499_v38, 2 }
  0x84   : > { %v400_v42 = vrot.slane %v399_v4, 1  ;;  %v434_v16 = vrot.slane %v433_v39, 1 }
  0x85   : > { %v468_v43 = vrot.slane %v467_v40, 1  ;;  %v501_v44 = vadd.f32 %v500_v41, %v499_v38 }
  0x86   : > { %v401_v45 = vadd.f32 %v400_v42, %v399_v4  ;;  %v435_v46 = vadd.f32 %v434_v16, %v433_v39 }
  0x87   : > { %v545_v47 = vld [vmem:[#allocation4] sm:$0xf]  ;;  %v469_v48 = vadd.f32 %v468_v43, %v467_v40  ;;  %v502_v49 = vrot.slane %v501_v44, 1 }
  0x88   : > { %v546_v50 = vsel %vm534_vm7, %v545_v47, 0.0  ;;  %v533_v51 = vld [vmem:[#allocation2] sm:$0xf]  ;;  %v525_v52 = vsel %vm505_vm5, %v401_v45, %v435_v46 }
  0x89   : > { %547 = vadd.xlane.f32.xlu1 %v546_v50  ;;  %v535_v54 = vsel %vm534_vm7, %v533_v51, 0.0  ;;  %v503_v55 = vadd.f32 %v502_v49, %v501_v44  ;;  %v526_v57 = vsel %vm371_vm0, %v525_v52, %v469_v48 }
  0x8a   : > { %536 = vadd.xlane.f32.xlu0 %v535_v54 }
  0x8b   : > { %v527_v58 = vsel %vm508_vm6, %v526_v57, %v503_v55 }
  0x8c   : > { %v528_v60 = vadd.f32 %v527_v58, %v524_v56 }
  0x8e   : > { %529 = vst [vmem:[#allocation5] sm:$0xf] %v528_v60  ;;  %542 = vadd.xlane.f32.xlu0 %v541_v59 }
  0x95   : > { %v550_v61 = vld [vmem:[#allocation5] sm:$0xf] }
  0x96   : > { %v551_v62 = vsel %vm534_vm7, %v550_v61, 0.0 }
  0x97   : > { %552 = vadd.xlane.f32.xlu1 %v551_v62 }
 0x112   : > { %v548_v63 = vpop.xlane.xlu1 %547 }
 0x113   : > { %549 = vst.msk [vmem:[%s321_s9] sm:$0xf] %vm538_vm8, %v548_v63  ;;  %v537_v0 = vpop.xlane.xlu0 %536 }
 0x114   : > { %539 = vst.msk [vmem:[%s313_s16] sm:$0xf] %vm538_vm8, %v537_v0 }
 0x117   : > { %v543_v1 = vpop.xlane.xlu0 %542 }
 0x118   : > { %544 = vst.msk [vmem:[%s317_s11] sm:$0xf] %vm538_vm8, %v543_v1 }
 0x120   : > { %v553_v2 = vpop.xlane.xlu1 %552 }
 0x121   : > { %554 = vst.msk [vmem:[%s325_s15] sm:$0xf] %vm538_vm8, %v553_v2 }
 0x122 PF: > { %s22_s23 = sadd.s32 1, %s949_s23   ;;  %s1207_s18 = smov %s933_s19 }
 0x123   : > { %p19_p9 = scmp.ge.s32.totalorder %s22_s23, 4   ;;  %s1208_s19 = smov %s937_s20 }
 0x124   : > { %s1209_s20 = smov %s1035_s30  ;;  %s1210_s21 = smov %s945_s22 }
 0x125   : > { %s1211_s22 = smov %s1213_s25  ;;  %21 = sbr.rel (!%p19_p9) target bundleno = 6 (0x6), region = 128 }
 0x12a   :  { %616 = vsyncpa [#allocation7], 1 }
 0x12b   :  { %618 = vsyncpa [#allocation7 + $0x1], 1 }
 0x12c   :  { %619 = vsyncpa [#allocation9], 1 }
 0x12d   :  { %621 = vsyncpa [#allocation9 + $0x1], 1 }

</bundles_post_ra>
